<compile_context>
chip_gen: v5e
topology: v5e:2x2
jax: 0.10.0
libtpu: 0.0.40
codegen_flags: <defaults>
</compile_context>

<pallas_src>
import functools

import jax
import jax.numpy as jnp
import numpy as np
from jax.experimental import pallas as pl
from jax.experimental.pallas import tpu as pltpu

# constants mirroring the module-level globals
M_SP = 8            # m : sparsity group size along input features
N_SP = 2            # n : kept elements per group
V_TILE = 64         # v : row-padding alignment used in forward()
KEEP_PER_GROUP = 2  # fixed pattern [1,0,1,0,0,0,0,0] keeps 2 of every 8


def _round_up(x, a):
    return x + (-x) % a


# ---------------------------------------------------------------------------
# Parameter preparation (done once, outside the per-forward path)
# ---------------------------------------------------------------------------

def _compact_cols(w):
    """Keep columns where (col % 8) in {0, 2} (the fixed NMVectorSparsifier mask)."""
    r, c = w.shape
    assert c % M_SP == 0
    return w.reshape(r, c // M_SP, M_SP)[:, :, 0:3:2].reshape(
        r, (c // M_SP) * KEEP_PER_GROUP)


def _compact_rows(w):
    """Keep rows where (row % 8) in {0, 2}."""
    r, c = w.shape
    assert r % M_SP == 0
    return w.reshape(r // M_SP, M_SP, c)[:, 0:3:2, :].reshape(
        (r // M_SP) * KEEP_PER_GROUP, c)


def _nm_mask(out_features, in_features, dtype=jnp.float32):
    """Dense form of the fixed 2:8 mask (only used by the pure-JAX reference)."""
    col = jnp.arange(in_features) % M_SP
    keep = (col == 0) | (col == 2)
    return jnp.broadcast_to(keep.astype(dtype), (out_features, in_features))


def _vmem_capacity_bytes():
    try:
        return int(pltpu.get_tpu_info().vmem_capacity_bytes)
    except Exception:
        return 64 * 1024 * 1024  # conservative default (v7x-sized)


def _vmem_budget_cap():
    """Generation-aware VMEM target: leave real headroom for compiler scratch."""
    cap = _vmem_capacity_bytes()
    if cap >= 100 * (1 << 20):   # v5e / v6e: 128 MiB physical
        return 100 * (1 << 20)
    return 40 * (1 << 20)        # v7x: 64 MiB physical


def prepare_params(w_gate, w_up, w_down, *, tile_i=512, dtype=jnp.bfloat16):
    """One-time weight preprocessing: 2:8 compaction, gate/up fusion, transpose,
    bf16 cast, padding.

    w_gate/w_up: [I, H]; w_down: [H, I] (PyTorch nn.Linear layout).
    Returns (wgu_t, wd_t, tile_i_eff):
      wgu_t : [H_c, K * 2*tile_i]  gate/up interleaved per k-tile
      wd_t  : [I_pad, H]
    """
    I, H = w_gate.shape
    assert w_up.shape == (I, H) and w_down.shape == (H, I)
    assert H % M_SP == 0 and I % M_SP == 0

    # gate/up keep only the 2:8 hidden input columns; additionally only the
    # intermediate rows that the down projection's own 2:8 mask keeps ever
    # contribute to the output, so drop the rest of the gate/up rows too.
    wg_c = _compact_rows(_compact_cols(w_gate))   # [I_c, H_c]
    wu_c = _compact_rows(_compact_cols(w_up))     # [I_c, H_c]
    wd_c = _compact_cols(w_down)                  # [H, I_c]
    I_c, H_c = wg_c.shape

    elt = jnp.dtype(dtype).itemsize
    I128 = _round_up(I_c, 128)  # 128-aligned compacted intermediate (zero pad)

    # Residency decision: compacted weights (x2 for worst-case double buffers)
    # plus ~8 MiB nominal per-row-tile working set vs the per-generation budget.
    resident_weight_bytes = 2 * (2 * I128 * H_c + I128 * H) * elt
    if resident_weight_bytes + 8 * (1 << 20) <= _vmem_budget_cap():
        tile_i_eff = I128                      # weights fully VMEM-resident, no k axis
    else:
        assert tile_i % 128 == 0, "tile_i must be a multiple of 128 when tiling I"
        tile_i_eff = tile_i

    I_pad = _round_up(I_c, tile_i_eff)
    pad_i = I_pad - I_c  # zero padding contributes exactly 0 to the output

    wg_t = jnp.pad(wg_c.T, ((0, 0), (0, pad_i))).astype(dtype)   # [H_c, I_pad]
    wu_t = jnp.pad(wu_c.T, ((0, 0), (0, pad_i))).astype(dtype)   # [H_c, I_pad]
    wd_t = jnp.pad(wd_c.T, ((0, pad_i), (0, 0))).astype(dtype)   # [I_pad, H]

    K = I_pad // tile_i_eff
    # Fuse gate/up: per k-tile, columns [0:tile_i] are gate, [tile_i:2*tile_i] are up.
    wgu_t = jnp.concatenate(
        [wg_t.reshape(H_c, K, tile_i_eff), wu_t.reshape(H_c, K, tile_i_eff)],
        axis=2).reshape(H_c, K * 2 * tile_i_eff)

    return wgu_t, wd_t, tile_i_eff


# ---------------------------------------------------------------------------
# Fused kernels
# ---------------------------------------------------------------------------

def _resident_kernel(x_ref, wgu_ref, wd_ref, out_ref, *, i_pad):
    """Weights VMEM-resident; one row tile per grid step; no reduction axis."""
    gu = jnp.dot(x_ref[...], wgu_ref[...],
                 preferred_element_type=jnp.float32)        # [TM, 2*I_pad]
    gate = gu[:, :i_pad]                                     # 128-aligned slice
    up = gu[:, i_pad:]
    h = (jax.nn.silu(gate) * up).astype(wd_ref.dtype)        # f32 math, bf16 operand
    out_ref[...] = jnp.dot(h, wd_ref[...],
                           preferred_element_type=jnp.float32).astype(out_ref.dtype)


def _tiled_kernel(x_ref, wgu_ref, wd_ref, out_ref, acc_ref, *, tile_i):
    """Large weights: stream intermediate tiles; f32 accumulate; cast on last k."""
    k = pl.program_id(1)
    gu = jnp.dot(x_ref[...], wgu_ref[...],
                 preferred_element_type=jnp.float32)         # [TM, 2*tile_i]
    gate = gu[:, :tile_i]
    up = gu[:, tile_i:]
    h = (jax.nn.silu(gate) * up).astype(wd_ref.dtype)
    partial = jnp.dot(h, wd_ref[...], preferred_element_type=jnp.float32)

    @pl.when(k == 0)
    def _init():
        acc_ref[...] = partial

    @pl.when(k > 0)
    def _accum():
        acc_ref[...] += partial

    @pl.when(k == pl.num_programs(1) - 1)
    def _finalize():
        out_ref[...] = acc_ref[...].astype(out_ref.dtype)


# ---------------------------------------------------------------------------
# Forward wrapper
# ---------------------------------------------------------------------------

def sp_qwen2_moe_mlp(hidden_states, prepared, *, tile_m=256):
    """hidden_states: [batch, hidden]; prepared = prepare_params(...)."""
    wgu_t, wd_t, tile_i = prepared
    batch, H = hidden_states.shape
    I_pad, H2 = wd_t.shape
    assert H2 == H
    H_c = wgu_t.shape[0]
    K = I_pad // tile_i
    assert wgu_t.shape == (H_c, K * 2 * tile_i)
    assert H % M_SP == 0 and H_c == (H // M_SP) * KEEP_PER_GROUP
    assert tile_m % V_TILE == 0

    compute_dtype = wgu_t.dtype
    out_dtype = hidden_states.dtype
    elt = jnp.dtype(compute_dtype).itemsize
    out_elt = jnp.dtype(out_dtype).itemsize

    # padding(tensor, 64): zero-pad rows to a multiple of 64; round up further to
    # the row tile (extra zero rows are sliced away and contribute nothing).
    m_pad64 = _round_up(max(batch, 1), V_TILE)
    TM = min(tile_m, m_pad64)
    if m_pad64 // TM == 1 and m_pad64 >= 2 * V_TILE:
        # keep >= 2 row tiles so the "parallel" axis can shard across v7x's 2 TCs
        TM = m_pad64 // 2
    Mpad = _round_up(batch, TM)
    n_row_tiles = Mpad // TM

    # bf16 cast BEFORE the pad + 2:8 column gather (halves this pre-pass's bytes).
    x = jnp.pad(hidden_states.astype(compute_dtype), ((0, Mpad - batch), (0, 0)))
    x_c = x.reshape(Mpad, H // M_SP, M_SP)[:, :, 0:3:2].reshape(Mpad, H_c)

    # VMEM budget (never set the limit below the actual footprint).
    if K == 1:
        weight_bytes = 2 * (wgu_t.size + wd_t.size) * elt        # worst-case 2 bufs
        acc_bytes = 0
    else:
        weight_bytes = 2 * (H_c * 2 * tile_i) * elt + 3 * (tile_i * H) * elt
        acc_bytes = TM * H * 4
    budget = (weight_bytes
              + 2 * TM * H_c * elt      # x row tile (double-buffered)
              + 2 * TM * H * out_elt    # output tile (double-buffered)
              + acc_bytes)
    cap = _vmem_budget_cap()
    vmem_limit = int(min(cap, max(budget * 1.25, 32 * (1 << 20))))
    vmem_limit = max(vmem_limit, int(budget))

    if K == 1:
        grid = (n_row_tiles,)
        kernel = functools.partial(_resident_kernel, i_pad=I_pad)
        in_specs = [
            pl.BlockSpec((TM, H_c), lambda i: (i, 0)),           # x row tile
            pl.BlockSpec((H_c, 2 * I_pad), lambda i: (0, 0)),    # fused gate/up (resident)
            pl.BlockSpec((I_pad, H), lambda i: (0, 0)),          # down weight (resident)
        ]
        out_specs = pl.BlockSpec((TM, H), lambda i: (i, 0))
        scratch_shapes = []
        dim_sem = ("parallel",)
    else:
        grid = (n_row_tiles, K)
        kernel = functools.partial(_tiled_kernel, tile_i=tile_i)
        try:
            # deeper buffering on the largest streamed operand
            wd_spec = pl.BlockSpec((tile_i, H), lambda i, k: (k, 0),
                                   pipeline_mode=pl.Buffered(3))
        except TypeError:
            wd_spec = pl.BlockSpec((tile_i, H), lambda i, k: (k, 0))
        in_specs = [
            pl.BlockSpec((TM, H_c), lambda i, k: (i, 0)),            # x row tile
            pl.BlockSpec((H_c, 2 * tile_i), lambda i, k: (0, k)),    # fused gate/up tile
            wd_spec,                                                 # down weight tile
        ]
        out_specs = pl.BlockSpec((TM, H), lambda i, k: (i, 0))
        scratch_shapes = [pltpu.VMEM((TM, H), jnp.float32)]
        dim_sem = ("parallel", "arbitrary")

    out = pl.pallas_call(
        kernel,
        out_shape=jax.ShapeDtypeStruct((Mpad, H), out_dtype),
        grid_spec=pltpu.PrefetchScalarGridSpec(
            num_scalar_prefetch=0,
            grid=grid,
            in_specs=in_specs,
            out_specs=out_specs,
            scratch_shapes=scratch_shapes,
        ),
        compiler_params=pltpu.CompilerParams(
            dimension_semantics=dim_sem,
            vmem_limit_bytes=vmem_limit,
        ),
    )(x_c, wgu_t, wd_t)

    return out[:batch, :]


# ---------------------------------------------------------------------------
# Pure-JAX reference (masked-dense, same bf16-operand / f32-acc numerics)
# ---------------------------------------------------------------------------

def _reference(hidden_states, w_gate, w_up, w_down):
    batch, H = hidden_states.shape
    I = w_gate.shape[0]
    wg = (w_gate * _nm_mask(I, H)).astype(jnp.bfloat16)
    wu = (w_up * _nm_mask(I, H)).astype(jnp.bfloat16)
    wd = (w_down * _nm_mask(H, I)).astype(jnp.bfloat16)
    pad_rows = (-batch) % V_TILE
    x = jnp.pad(hidden_states, ((0, pad_rows), (0, 0))).astype(jnp.bfloat16)
    gate = jnp.dot(x, wg.T, preferred_element_type=jnp.float32)
    up = jnp.dot(x, wu.T, preferred_element_type=jnp.float32)
    h = (jax.nn.silu(gate) * up).astype(jnp.bfloat16)
    out = jnp.dot(h, wd.T, preferred_element_type=jnp.float32)
    return out[:batch, :].astype(hidden_states.dtype)


if __name__ == "__main__":
    # small shapes consistent with the module: 2D hidden_states [batch, hidden]
    batch = 2
    hidden_size = 32          # divisible by m=8
    intermediate_size = 128   # divisible by m=8

    key = jax.random.PRNGKey(0)
    kx, kg, ku, kd = jax.random.split(key, 4)
    x = jax.random.normal(kx, (batch, hidden_size), dtype=jnp.float32)
    w_gate = jax.random.normal(kg, (intermediate_size, hidden_size), dtype=jnp.float32) * 0.05
    w_up = jax.random.normal(ku, (intermediate_size, hidden_size), dtype=jnp.float32) * 0.05
    w_down = jax.random.normal(kd, (hidden_size, intermediate_size), dtype=jnp.float32) * 0.05

    prepared = prepare_params(w_gate, w_up, w_down, tile_i=512)
    out = sp_qwen2_moe_mlp(x, prepared, tile_m=256)
    out = jax.block_until_ready(out)

    ref = jax.block_until_ready(_reference(x, w_gate, w_up, w_down))
    np.testing.assert_allclose(np.asarray(out), np.asarray(ref), rtol=1e-2, atol=1e-2)

    print("KERNEL_OK")
</pallas_src>

<mosaic_0001>
module attributes {stable_mosaic.version = 11 : i64} {
  func.func @_resident_kernel(%arg0: i32, %arg1: memref<64x8xbf16, #tpu.memory_space<vmem>>, %arg2: memref<8x256xbf16, #tpu.memory_space<vmem>>, %arg3: memref<128x32xbf16, #tpu.memory_space<vmem>>, %arg4: memref<64x32xf32, #tpu.memory_space<vmem>>) attributes {dimension_semantics = [#tpu.dimension_semantics<parallel>], iteration_bounds = array<i64: 1>, scalar_prefetch = 0 : i64, scratch_operands = 0 : i64, tpu.core_type = #tpu.core_type<tc>, window_params = [{transform_indices = @transform_0, window_bounds = array<i64: 64, 8>}, {pipeline_mode = #tpu.pipeline_mode<synchronous>, transform_indices = @transform_1, window_bounds = array<i64: 8, 256>}, {pipeline_mode = #tpu.pipeline_mode<synchronous>, transform_indices = @transform_2, window_bounds = array<i64: 128, 32>}, {transform_indices = @transform_3, window_bounds = array<i64: 64, 32>}]} {
    %c0 = arith.constant 0 : index
    %c0_0 = arith.constant 0 : index
    %0 = vector.load %arg1[%c0, %c0_0] : memref<64x8xbf16, #tpu.memory_space<vmem>>, vector<64x8xbf16>
    %c0_1 = arith.constant 0 : index
    %c0_2 = arith.constant 0 : index
    %1 = vector.load %arg2[%c0_1, %c0_2] : memref<8x256xbf16, #tpu.memory_space<vmem>>, vector<8x256xbf16>
    %cst = arith.constant dense<0.000000e+00> : vector<64x256xf32>
    %2 = tpu.matmul %0, %1, %cst {dimension_numbers = #tpu.dot_dimension_numbers<[1], [0], [0], [1], [0, 0, 1, 1], [], []>} : vector<64x8xbf16>, vector<8x256xbf16>, vector<64x256xf32> -> vector<64x256xf32>
    %3 = vector.extract_strided_slice %2 {offsets = [0, 0], sizes = [64, 128], strides = [1, 1]} : vector<64x256xf32> to vector<64x128xf32>
    %4 = vector.extract_strided_slice %2 {offsets = [0, 128], sizes = [64, 128], strides = [1, 1]} : vector<64x256xf32> to vector<64x128xf32>
    %5 = arith.negf %3 : vector<64x128xf32>
    %6 = math.exp %5 : vector<64x128xf32>
    %cst_3 = arith.constant 1.000000e+00 : f32
    %7 = vector.broadcast %cst_3 : f32 to vector<64x128xf32>
    %8 = arith.addf %7, %6 : vector<64x128xf32>
    %9 = arith.divf %7, %8 : vector<64x128xf32>
    %10 = arith.mulf %3, %9 : vector<64x128xf32>
    %11 = arith.mulf %10, %4 : vector<64x128xf32>
    %12 = arith.truncf %11 : vector<64x128xf32> to vector<64x128xbf16>
    %c0_4 = arith.constant 0 : index
    %c0_5 = arith.constant 0 : index
    %13 = vector.load %arg3[%c0_4, %c0_5] : memref<128x32xbf16, #tpu.memory_space<vmem>>, vector<128x32xbf16>
    %cst_6 = arith.constant dense<0.000000e+00> : vector<64x32xf32>
    %14 = tpu.matmul %12, %13, %cst_6 {dimension_numbers = #tpu.dot_dimension_numbers<[1], [0], [0], [1], [0, 0, 1, 1], [], []>} : vector<64x128xbf16>, vector<128x32xbf16>, vector<64x32xf32> -> vector<64x32xf32>
    %c0_7 = arith.constant 0 : index
    %c0_8 = arith.constant 0 : index
    %15 = vector.load %arg4[%c0_7, %c0_8] : memref<64x32xf32, #tpu.memory_space<vmem>>, vector<64x32xf32>
    tpu.vector_store %arg4[%c0_7, %c0_8], %14 {strides = array<i32>} : memref<64x32xf32, #tpu.memory_space<vmem>>, vector<64x32xf32>,
    return
  }
  func.func @transform_0(%arg0: i32) -> (i32, i32) {
    %c0_i32 = arith.constant 0 : i32
    %c0_i32_0 = arith.constant 0 : i32
    return %arg0, %c0_i32 : i32, i32
  }
  func.func @transform_1(%arg0: i32) -> (i32, i32) {
    %c0_i32 = arith.constant 0 : i32
    %c0_i32_0 = arith.constant 0 : i32
    %c0_i32_1 = arith.constant 0 : i32
    return %c0_i32, %c0_i32_0 : i32, i32
  }
  func.func @transform_2(%arg0: i32) -> (i32, i32) {
    %c0_i32 = arith.constant 0 : i32
    %c0_i32_0 = arith.constant 0 : i32
    %c0_i32_1 = arith.constant 0 : i32
    return %c0_i32, %c0_i32_0 : i32, i32
  }
  func.func @transform_3(%arg0: i32) -> (i32, i32) {
    %c0_i32 = arith.constant 0 : i32
    %c0_i32_0 = arith.constant 0 : i32
    return %arg0, %c0_i32 : i32, i32
  }
}

</mosaic_0001>

<bundles_post_ra>
// kernel: tpu_custom_call.1
= control target key start
LH: loop header
LB: loop body
LE: loop exit
PB: predicated region body
PF: predicated region fallthrough
CT: control target
= control target key end

     0   :  { %vm62_vm0 = vcmask 1043456   ;;  %vm49_vm1 = vcmask 64512   ;;  %s636_s1 = inlined_call_operand.vmem [shape: bf16[8,256], index: 1, kind: input, shape index: {}]   ;;  %s637_s0 = inlined_call_operand.vmem [shape: bf16[64,8], index: 0, kind: input, shape index: {}]   ;;  %s638_s2 = inlined_call_operand.vmem [shape: bf16[128,32], index: 2, kind: input, shape index: {}]   ;;  %s639_s3 = inlined_call_operand.vmem [shape: f32[64,32], index: 3, kind: output, shape index: {}]  }
   0x1   :  { %v23_v0 = vld [vmem:[%s636_s1] sm:$0xff]  ;;  %v470_v8 = vld [vmem:[%s637_s0 + $0x8] sm:$0xff]  ;;  %v471_v9 = vld [vmem:[%s637_s0 + $0x10] sm:$0xff] }
   0x2   :  { %v45_v1 = vunpack.c.l.b16 %v23_v0  ;;  %v46_v2 = vunpack.c.h.b16 %v23_v0  ;;  %v469_v6 = vld [vmem:[%s637_s0] sm:$0xff]  ;;  %v472_v10 = vld [vmem:[%s637_s0 + $0x18] sm:$0xff]  ;;  %v479_v12 = vld [vmem:[%s638_s2 + $0x30] sm:$0xff] }
   0x3   :  { %v480_v11 = vld [vmem:[%s638_s2 + $0x38] sm:$0xff]  ;;  %v478_v13 = vld [vmem:[%s638_s2 + $0x28] sm:$0xff]  ;;  %v477_v14 = vld [vmem:[%s638_s2 + $0x20] sm:$0xff] }
   0x4   :  { %v47_v3 = vpack.c.b16 %v45_v1, %v45_v1  ;;  %v48_v4 = vpack.c.b16 %v46_v2, %v46_v2  ;;  %363 = vmatpush.bf16.msra.mxu2 %v480_v11  ;;  %481 = vmatpush.bf16.msra.mxu3 %v480_v11  ;;  %v476_v15 = vld [vmem:[%s638_s2 + $0x18] sm:$0xff]  ;;  %v475_v16 = vld [vmem:[%s638_s2 + $0x10] sm:$0xff]  ;;  %v474_v19 = vld [vmem:[%s638_s2 + $0x8] sm:$0xff] }
   0x5   :  { %v473_v20 = vld [vmem:[%s638_s2] sm:$0xff] }
   0x6   :  { %v64_v5 = vsel %vm62_vm0, %v47_v3, 0  ;;  %v67_v7 = vsel %vm62_vm0, %v48_v4, 0 }
   0x7   :  { %76 = vmatpush.bf16.msra.mxu0 %v64_v5  ;;  %105 = vmatpush.bf16.msra.mxu1 %v67_v7 }
   0x8   :  { %364 = vmatpush.bf16.msra.mxu2 %v479_v12  ;;  %482 = vmatpush.bf16.msra.mxu3 %v479_v12 }
   0xa   :  { %421 = vmatmul.msk.bf16.vlgmr.msra.gmra.mxu0 %vm49_vm1, %v469_v6  ;;  %425 = vmatmul.msk.bf16.vlgmr.msra.gmra.mxu1 %vm49_vm1, %v469_v6 }
   0xc   :  { %365 = vmatpush.bf16.msra.mxu2 %v478_v13  ;;  %483 = vmatpush.bf16.msra.mxu3 %v478_v13 }
  0x10   :  { %366 = vmatpush.bf16.msra.mxu2 %v477_v14  ;;  %484 = vmatpush.bf16.msra.mxu3 %v477_v14 }
  0x14   :  { %367 = vmatpush.bf16.msra.mxu2 %v476_v15  ;;  %485 = vmatpush.bf16.msra.mxu3 %v476_v15 }
  0x18   :  { %368 = vmatpush.bf16.msra.mxu2 %v475_v16  ;;  %486 = vmatpush.bf16.msra.mxu3 %v475_v16 }
  0x1a   :  { %422 = vmatmul.msk.bf16.gmra.mxu0 %vm49_vm1, %v470_v8  ;;  %426 = vmatmul.msk.bf16.gmra.mxu1 %vm49_vm1, %v470_v8 }
  0x1c   :  { %369 = vmatpush.bf16.msra.mxu2 %v474_v19  ;;  %487 = vmatpush.bf16.msra.mxu3 %v474_v19 }
  0x20   :  { %370 = vmatpush.bf16.msra.mxu2 %v473_v20  ;;  %488 = vmatpush.bf16.msra.mxu3 %v473_v20 }
  0x2a   :  { %423 = vmatmul.msk.bf16.gmra.mxu0 %vm49_vm1, %v471_v9  ;;  %427 = vmatmul.msk.bf16.gmra.mxu1 %vm49_vm1, %v471_v9 }
  0x3a   :  { %424 = vmatmul.msk.bf16.gmra.mxu0 %vm49_vm1, %v472_v10  ;;  %428 = vmatmul.msk.bf16.gmra.mxu1 %vm49_vm1, %v472_v10 }
  0x87   :  { %v78_v17 = vpop.f32.mrf.mxu0  ;;  %v107_v26 = vpop.f32.mrf.mxu1 }
  0x88   :  { %v429_v18 = vmul.f32 -1.442695, %v78_v17 }
  0x8a   :  { %489 = vpow2.f32 %v429_v18 }
  0x8f   :  { %v80_v21 = vpop.f32.mrf.mxu0  ;;  %v109_v41 = vpop.f32.mrf.mxu1 }
  0x90   :  { %v490_v22 = vpop.eup %489  ;;  %v430_v23 = vmul.f32 -1.442695, %v80_v21 }
  0x91   :  { %v151_v24 = vadd.f32 1.0, %v490_v22 }
  0x92   :  { %491 = vpow2.f32 %v430_v23 }
  0x93   :  { %493 = vrcp.f32 %v151_v24  ;;  %v170_v39 = vand.u32 2147483648, %v151_v24  ;;  %vm164_vm3 = vweird.f32 %v151_v24  ;;  %v168_v42 = vand.u32 2147483647, %v151_v24 }
  0x95   :  { %v171_v46 = vor.u32 1.1754944e-38, %v170_v39  ;;  %vm169_vm5 = vcmp.eq.f32.partialorder %v168_v42, 8.507059e+37 }
  0x97   :  { %v580_v25 = vpop.f32.mrf.mxu0  ;;  %v112_v62 = vpop.f32.mrf.mxu1 }
  0x98   :  { %v492_v27 = vpop.eup %491  ;;  %v431_v28 = vmul.f32 -1.442695, %v580_v25 }
  0x99   :  { %v494_v29 = vpop.eup %493  ;;  %v152_v30 = vadd.f32 1.0, %v492_v27 }
  0x9a   :  { %v160_v31 = vmul.f32 %v494_v29, %v151_v24  ;;  %495 = vpow2.f32 %v431_v28  ;;  %vm165_vm2 = vweird.f32 %v494_v29 }
  0x9b   :  { %497 = vrcp.f32 %v152_v30  ;;  %vm166_vm4 = vmor %vm164_vm3, %vm165_vm2  ;;  %v183_v47 = vand.u32 2147483647, %v152_v30  ;;  %v185_v48 = vand.u32 2147483648, %v152_v30  ;;  %vm179_vm7 = vweird.f32 %v152_v30 }
  0x9c   :  { %v161_v32 = vsub.f32 1.0, %v160_v31 }
  0x9d   :  { %vm184_vm9 = vcmp.eq.f32.partialorder %v183_v47, 8.507059e+37  ;;  %v186_v56 = vor.u32 1.1754944e-38, %v185_v48 }
  0x9e   :  { %v162_v33 = vmul.f32 %v494_v29, %v161_v32 }
  0x9f   :  { %v583_v34 = vpop.f32.mrf.mxu0  ;;  %v114_v19 = vpop.f32.mrf.mxu1 }
  0xa0   :  { %v496_v35 = vpop.eup %495  ;;  %v163_v36 = vadd.f32 %v494_v29, %v162_v33  ;;  %v432_v37 = vmul.f32 -1.442695, %v583_v34 }
  0xa1   :  { %v498_v38 = vpop.eup %497  ;;  %v153_v40 = vadd.f32 1.0, %v496_v35 }
  0xa2   :  { %v175_v43 = vmul.f32 %v498_v38, %v152_v30  ;;  %499 = vpow2.f32 %v432_v37  ;;  %v167_v44 = vsel %vm166_vm4, %v494_v29, %v163_v36  ;;  %vm180_vm6 = vweird.f32 %v498_v38 }
  0xa3   :  { %501 = vrcp.f32 %v153_v40  ;;  %v172_v50 = vsel %vm169_vm5, %v171_v46, %v167_v44  ;;  %vm181_vm8 = vmor %vm179_vm7, %vm180_vm6  ;;  %v200_v10 = vand.u32 2147483648, %v153_v40  ;;  %vm194_vm11 = vweird.f32 %v153_v40 }
  0xa4   :  { %v176_v45 = vsub.f32 1.0, %v175_v43  ;;  %v279_v58 = vmul.f32 %v172_v50, %v78_v17  ;;  %v198_v12 = vand.u32 2147483647, %v153_v40 }
  0xa5   :  { %v201_v16 = vor.u32 1.1754944e-38, %v200_v10 }
  0xa6   :  { %v177_v49 = vmul.f32 %v498_v38, %v176_v45  ;;  %v287_v2 = vmul.f32 %v279_v58, %v107_v26  ;;  %vm199_vm13 = vcmp.eq.f32.partialorder %v198_v12, 8.507059e+37 }
  0xa7   :  { %v586_v51 = vpop.f32.mrf.mxu0 }
  0xa8   :  { %v500_v52 = vpop.eup %499  ;;  %v178_v53 = vadd.f32 %v498_v38, %v177_v49  ;;  %v433_v54 = vmul.f32 -1.442695, %v586_v51 }
  0xa9   :  { %v502_v55 = vpop.eup %501  ;;  %v154_v57 = vadd.f32 1.0, %v500_v52 }
  0xaa   :  { %v182_v59 = vsel %vm181_vm8, %v498_v38, %v178_v53  ;;  %v190_v60 = vmul.f32 %v502_v55, %v153_v40  ;;  %503 = vpow2.f32 %v433_v54  ;;  %vm195_vm10 = vweird.f32 %v502_v55  ;;  %v117_v40 = vpop.f32.mrf.mxu1 }
  0xab   :  { %v187_v61 = vsel %vm184_vm9, %v186_v56, %v182_v59  ;;  %505 = vrcp.f32 %v154_v57  ;;  %vm196_vm12 = vmor %vm194_vm11, %vm195_vm10  ;;  %v213_v17 = vand.u32 2147483647, %v154_v57  ;;  %v215_v18 = vand.u32 2147483648, %v154_v57 }
  0xac   :  { %v280_v63 = vmul.f32 %v187_v61, %v80_v21  ;;  %v191_v0 = vsub.f32 1.0, %v190_v60  ;;  %vm209_vm15 = vweird.f32 %v154_v57 }
  0xad   :  { %vm214_vm1 = vcmp.eq.f32.partialorder %v213_v17, 8.507059e+37  ;;  %v216_v28 = vor.u32 1.1754944e-38, %v215_v18 }
  0xae   :  { %v192_v1 = vmul.f32 %v502_v55, %v191_v0  ;;  %v288_v3 = vmul.f32 %v280_v63, %v109_v41 }
  0xaf   :  { %v589_v4 = vpop.f32.mrf.mxu0 }
  0xb0   :  { %v504_v5 = vpop.eup %503  ;;  %v193_v6 = vadd.f32 %v502_v55, %v192_v1  ;;  %v434_v7 = vmul.f32 -1.442695, %v589_v4  ;;  %v295_v8 = vpack.c.bf16 %v288_v3, %v287_v2 }
  0xb1   :  { %v506_v9 = vpop.eup %505  ;;  %v155_v11 = vadd.f32 1.0, %v504_v5 }
  0xb2   :  { %v205_v13 = vmul.f32 %v506_v9, %v154_v57  ;;  %507 = vpow2.f32 %v434_v7  ;;  %371 = vmatmul.bf16.vlgmr.msra.gmra.mxu2 %v295_v8  ;;  %v197_v14 = vsel %vm196_vm12, %v502_v55, %v193_v6  ;;  %vm210_vm14 = vweird.f32 %v506_v9 }
  0xb3   :  { %509 = vrcp.f32 %v155_v11  ;;  %v202_v21 = vsel %vm199_vm13, %v201_v16, %v197_v14  ;;  %vm211_vm0 = vmor %vm209_vm15, %vm210_vm14  ;;  %v230_v46 = vand.u32 2147483648, %v155_v11  ;;  %vm224_vm3 = vweird.f32 %v155_v11 }
  0xb4   :  { %v206_v15 = vsub.f32 1.0, %v205_v13  ;;  %v281_v30 = vmul.f32 %v202_v21, %v580_v25  ;;  %v228_v48 = vand.u32 2147483647, %v155_v11 }
  0xb5   :  { %v231_v52 = vor.u32 1.1754944e-38, %v230_v46 }
  0xb6   :  { %v207_v20 = vmul.f32 %v506_v9, %v206_v15  ;;  %v289_v38 = vmul.f32 %v281_v30, %v112_v62  ;;  %vm229_vm5 = vcmp.eq.f32.partialorder %v228_v48, 8.507059e+37  ;;  %v119_v62 = vpop.f32.mrf.mxu1 }
  0xb7   :  { %v592_v22 = vpop.f32.mrf.mxu0 }
  0xb8   :  { %v508_v23 = vpop.eup %507  ;;  %v208_v24 = vadd.f32 %v506_v9, %v207_v20  ;;  %v435_v26 = vmul.f32 -1.442695, %v592_v22 }
  0xb9   :  { %v510_v27 = vpop.eup %509  ;;  %v156_v29 = vadd.f32 1.0, %v508_v23 }
  0xba   :  { %v212_v31 = vsel %vm211_vm0, %v506_v9, %v208_v24  ;;  %v220_v32 = vmul.f32 %v510_v27, %v155_v11  ;;  %511 = vpow2.f32 %v435_v26  ;;  %vm225_vm2 = vweird.f32 %v510_v27 }
  0xbb   :  { %v217_v33 = vsel %vm214_vm1, %v216_v28, %v212_v31  ;;  %513 = vrcp.f32 %v156_v29  ;;  %vm226_vm4 = vmor %vm224_vm3, %vm225_vm2  ;;  %v245_v53 = vand.u32 2147483648, %v156_v29  ;;  %v243_v55 = vand.u32 2147483647, %v156_v29 }
  0xbc   :  { %v282_v35 = vmul.f32 %v217_v33, %v583_v34  ;;  %v221_v36 = vsub.f32 1.0, %v220_v32  ;;  %vm239_vm7 = vweird.f32 %v156_v29  ;;  %vm392_vm2 = vcmask 261120  }
  0xbd   :  { %v246_v60 = vor.u32 1.1754944e-38, %v245_v53  ;;  %vm244_vm9 = vcmp.eq.f32.partialorder %v243_v55, 8.507059e+37 }
  0xbe   :  { %v222_v37 = vmul.f32 %v510_v27, %v221_v36  ;;  %v290_v39 = vmul.f32 %v282_v35, %v114_v19 }
  0xbf   :  { %v597_v41 = vpop.f32.mrf.mxu0 }
  0xc0   :  { %v512_v42 = vpop.eup %511  ;;  %v223_v43 = vadd.f32 %v510_v27, %v222_v37  ;;  %v436_v44 = vmul.f32 -1.442695, %v597_v41  ;;  %v296_v25 = vpack.c.bf16 %v290_v39, %v289_v38 }
  0xc1   :  { %v514_v45 = vpop.eup %513  ;;  %v157_v47 = vadd.f32 1.0, %v512_v42 }
  0xc2   :  { %v235_v49 = vmul.f32 %v514_v45, %v156_v29  ;;  %515 = vpow2.f32 %v436_v44  ;;  %376 = vmatmul.bf16.vlgmr.msra.gmra.mxu3 %v296_v25  ;;  %v227_v34 = vsel %vm226_vm4, %v510_v27, %v223_v43  ;;  %vm240_vm6 = vweird.f32 %v514_v45 }
  0xc3   :  { %517 = vrcp.f32 %v157_v47  ;;  %v232_v56 = vsel %vm229_vm5, %v231_v52, %v227_v34  ;;  %vm241_vm8 = vmor %vm239_vm7, %vm240_vm6  ;;  %v260_v12 = vand.u32 2147483648, %v157_v47  ;;  %vm254_vm11 = vweird.f32 %v157_v47 }
  0xc4   :  { %v236_v50 = vsub.f32 1.0, %v235_v49  ;;  %v283_v63 = vmul.f32 %v232_v56, %v586_v51  ;;  %v258_v13 = vand.u32 2147483647, %v157_v47  ;;  %v122_v51 = vpop.f32.mrf.mxu1 }
  0xc5   :  { %v261_v17 = vor.u32 1.1754944e-38, %v260_v12 }
  0xc6   :  { %v237_v54 = vmul.f32 %v514_v45, %v236_v50  ;;  %v291_v7 = vmul.f32 %v283_v63, %v117_v40  ;;  %vm259_vm13 = vcmp.eq.f32.partialorder %v258_v13, 8.507059e+37 }
  0xc8   :  { %v516_v57 = vpop.eup %515  ;;  %v238_v58 = vadd.f32 %v514_v45, %v237_v54 }
  0xc9   :  { %v518_v59 = vpop.eup %517  ;;  %v158_v61 = vadd.f32 1.0, %v516_v57 }
  0xca   :  { %v242_v0 = vsel %vm241_vm8, %v514_v45, %v238_v58  ;;  %v250_v1 = vmul.f32 %v518_v59, %v157_v47  ;;  %vm255_vm10 = vweird.f32 %v518_v59 }
  0xcb   :  { %v247_v2 = vsel %vm244_vm9, %v246_v60, %v242_v0  ;;  %519 = vrcp.f32 %v158_v61  ;;  %vm256_vm12 = vmor %vm254_vm11, %vm255_vm10  ;;  %v275_v18 = vand.u32 2147483648, %v158_v61  ;;  %v273_v19 = vand.u32 2147483647, %v158_v61 }
  0xcc   :  { %v284_v3 = vmul.f32 %v247_v2, %v589_v4  ;;  %v251_v5 = vsub.f32 1.0, %v250_v1  ;;  %vm269_vm15 = vweird.f32 %v158_v61  ;;  %v124_v29 = vpop.f32.mrf.mxu1 }
  0xcd   :  { %v276_v23 = vor.u32 1.1754944e-38, %v275_v18  ;;  %vm274_vm1 = vcmp.eq.f32.partialorder %v273_v19, 8.507059e+37 }
  0xce   :  { %v252_v6 = vmul.f32 %v518_v59, %v251_v5  ;;  %v292_v8 = vmul.f32 %v284_v3, %v119_v62 }
  0xd0   :  { %v253_v9 = vadd.f32 %v518_v59, %v252_v6  ;;  %v297_v10 = vpack.c.bf16 %v292_v8, %v291_v7 }
  0xd1   :  { %v520_v11 = vpop.eup %519 }
  0xd2   :  { %v265_v14 = vmul.f32 %v520_v11, %v158_v61  ;;  %381 = vmatmul.bf16.gmra.mxu3 %v297_v10  ;;  %v257_v15 = vsel %vm256_vm12, %v518_v59, %v253_v9  ;;  %vm270_vm14 = vweird.f32 %v520_v11 }
  0xd3   :  { %v262_v20 = vsel %vm259_vm13, %v261_v17, %v257_v15  ;;  %vm271_vm0 = vmor %vm269_vm15, %vm270_vm14 }
  0xd4   :  { %v266_v16 = vsub.f32 1.0, %v265_v14  ;;  %v285_v24 = vmul.f32 %v262_v20, %v592_v22 }
  0xd6   :  { %v267_v4 = vmul.f32 %v520_v11, %v266_v16  ;;  %v293_v30 = vmul.f32 %v285_v24, %v122_v51 }
  0xd8   :  { %v268_v21 = vadd.f32 %v520_v11, %v267_v4 }
  0xda   :  { %v272_v26 = vsel %vm271_vm0, %v520_v11, %v268_v21 }
  0xdb   :  { %v277_v27 = vsel %vm274_vm1, %v276_v23, %v272_v26 }
  0xdc   :  { %v286_v28 = vmul.f32 %v277_v27, %v597_v41 }
  0xde   :  { %v294_v31 = vmul.f32 %v286_v28, %v124_v29 }
  0xe0   :  { %v298_v32 = vpack.c.bf16 %v294_v31, %v293_v30 }
  0xe2   :  { %386 = vmatmul.bf16.gmra.mxu3 %v298_v32 }
 0x135   :  { %v372_v33 = vpop.f32.mrf.mxu2 }
 0x136   :  { %393 = vst.msk [vmem:[%s639_s3] sm:$0xff] %vm392_vm2, %v372_v33 }
 0x13d   :  { %v374_v35 = vpop.f32.mrf.mxu2 }
 0x13e   :  { %394 = vst.msk [vmem:[%s639_s3 + $0x8] sm:$0xff] %vm392_vm2, %v374_v35 }
 0x145   :  { %v377_v22 = vpop.f32.mrf.mxu3 }
 0x146   :  { %395 = vst.msk [vmem:[%s639_s3 + $0x10] sm:$0xff] %vm392_vm2, %v377_v22 }
 0x14d   :  { %v379_v36 = vpop.f32.mrf.mxu3 }
 0x14e   :  { %396 = vst.msk [vmem:[%s639_s3 + $0x18] sm:$0xff] %vm392_vm2, %v379_v36 }
 0x155   :  { %v382_v37 = vpop.f32.mrf.mxu3 }
 0x156   :  { %397 = vst.msk [vmem:[%s639_s3 + $0x20] sm:$0xff] %vm392_vm2, %v382_v37 }
 0x15d   :  { %v384_v38 = vpop.f32.mrf.mxu3 }
 0x15e   :  { %398 = vst.msk [vmem:[%s639_s3 + $0x28] sm:$0xff] %vm392_vm2, %v384_v38 }
 0x165   :  { %v387_v39 = vpop.f32.mrf.mxu3 }
 0x166   :  { %399 = vst.msk [vmem:[%s639_s3 + $0x30] sm:$0xff] %vm392_vm2, %v387_v39 }
 0x16d   :  { %v389_v40 = vpop.f32.mrf.mxu3 }
 0x16e   :  { %400 = vst.msk [vmem:[%s639_s3 + $0x38] sm:$0xff] %vm392_vm2, %v389_v40 }

</bundles_post_ra>
